<compile_context>
chip_gen: v6e
topology: v6e:2x2x1
jax: 0.10.0
libtpu: 0.0.40
codegen_flags: <defaults>
</compile_context>

<pallas_src>
import functools

import jax
import jax.numpy as jnp
from jax.experimental import pallas as pl
from jax.experimental.pallas import tpu as pltpu


# ------------------------------ kernels -------------------------------------


def _fused_block_kernel(x_ref, w1_ref, s1_ref, b1_ref,
                        wa_ref, sa_ref, ba_ref,
                        wb_ref, sb_ref, bb_ref,
                        wu_ref, bu_ref, o_ref, *, H, W, roll_sign):
    # x_ref : (Cin_p, H*W)   one image, channels on sublanes, pixels on lanes
    # w*_ref: (Cout, 9*Cin)  im2col-reshaped conv weights (tap-major columns)
    # s*/b* : (Cout, 1)      folded BatchNorm scale / bias
    # wu_ref: (4*Ch, Cout)   2x2 transposed-conv weight, rows = (di*2+dj)*Ch+co
    # bu_ref: (4*Ch, 1)
    # o_ref : (4*Ch, H*W)
    HW = H * W
    pix = jax.lax.broadcasted_iota(jnp.int32, (1, HW), 1)
    py = pix // W
    px = pix % W

    def conv3x3_bn_relu(a, w2, scale, bias):
        # a: (Cin, HW) -> (Cout, HW); single MXU matmul with K = 9*Cin.
        parts = []
        for oy in (-1, 0, 1):
            for ox in (-1, 0, 1):
                d = oy * W + ox
                if d == 0:
                    parts.append(a)
                    continue
                # shifted[:, p] == a[:, p + d] on the valid region (XLU roll,
                # wrap-around killed by the border mask).
                shifted = pltpu.roll(a, (roll_sign * d) % HW, axis=1)
                valid = ((py + oy >= 0) & (py + oy < H) &
                         (px + ox >= 0) & (px + ox < W))
                parts.append(jnp.where(valid, shifted, 0.0))
        patches = jnp.concatenate(parts, axis=0)              # (9*Cin, HW)
        acc = jnp.dot(w2, patches, preferred_element_type=jnp.float32)
        return jnp.maximum(acc * scale + bias, 0.0)           # (Cout, HW)

    x = x_ref[...]
    x1 = conv3x3_bn_relu(x, w1_ref[...], s1_ref[...], b1_ref[...])   # self.conv
    xm = conv3x3_bn_relu(x1, wa_ref[...], sa_ref[...], ba_ref[...])  # mid[0:3]
    xm = conv3x3_bn_relu(xm, wb_ref[...], sb_ref[...], bb_ref[...])  # mid[3:6]
    s = xm + x1                                                      # residual
    y = jnp.dot(wu_ref[...], s, preferred_element_type=jnp.float32) + bu_ref[...]
    o_ref[...] = y.astype(o_ref.dtype)                               # (4Ch, HW)


def _detect_roll_sign():
    """1-vreg probe pinning pltpu.roll's direction convention at runtime so the
    tap shifts can't silently flip if the convention ever changes."""
    def probe(x_ref, o_ref):
        o_ref[...] = pltpu.roll(x_ref[...], 1, axis=1)

    x = jnp.tile(jnp.arange(128, dtype=jnp.float32)[None, :], (8, 1))
    out = pl.pallas_call(
        probe, out_shape=jax.ShapeDtypeStruct((8, 128), jnp.float32))(x)
    out = jax.block_until_ready(out)
    # np.roll convention (element i -> i+shift): out[:, 1] == x[:, 0] == 0.
    return -1 if float(out[0, 1]) == 0.0 else 1


# ------------------------------ wrappers ------------------------------------


def prepare_params(p):
    """Hoisted, one-time reshaping of weights into kernel layout."""
    cout = p["w1"].shape[3]
    ch = p["w_up"].shape[1]

    def prep_conv_w(w):
        ci, co = w.shape[2], w.shape[3]
        ci_p = ((ci + 7) // 8) * 8                      # sublane-align channels
        if ci_p != ci:
            w = jnp.pad(w, ((0, 0), (0, 0), (0, ci_p - ci), (0, 0)))
        # (3,3,ci,co) -> (co, 9*ci), column = (dy*3+dx)*ci + c
        return jnp.transpose(w, (3, 0, 1, 2)).reshape(co, 9 * ci_p)

    return dict(
        w1=prep_conv_w(p["w1"]),
        s1=p["s1"].reshape(cout, 1), b1=p["b1"].reshape(cout, 1),
        wa=prep_conv_w(p["wa"]),
        sa=p["sa"].reshape(cout, 1), ba=p["ba"].reshape(cout, 1),
        wb=prep_conv_w(p["wb"]),
        sb=p["sb"].reshape(cout, 1), bb=p["bb"].reshape(cout, 1),
        # (C, Ch, 2, 2) -> (4*Ch, C), rows ordered (di*2+dj)*Ch + co
        wu=jnp.transpose(p["w_up"], (2, 3, 1, 0)).reshape(4 * ch, cout),
        bu=jnp.tile(p["b_up"], 4).reshape(4 * ch, 1),
    )


def _const_spec(shape):
    return pl.BlockSpec(shape, lambda n: (0,) * len(shape))


def residual_mid_bridge_forward(x_nchw, kp, *, roll_sign):
    N, cin, H, W = x_nchw.shape
    HW = H * W
    cout = kp["w1"].shape[0]
    cin_p = kp["w1"].shape[1] // 9
    ch = kp["bu"].shape[0] // 4

    # NCHW is already channels-first: only a free reshape (+ channel pad to 8).
    x2d = x_nchw.reshape(N, cin, HW)
    if cin_p != cin:
        x2d = jnp.concatenate(
            [x2d, jnp.zeros((N, cin_p - cin, HW), x2d.dtype)], axis=1)

    kernel = functools.partial(_fused_block_kernel, H=H, W=W,
                               roll_sign=roll_sign)

    flops = 2 * N * HW * (9 * cin_p * cout + 2 * 9 * cout * cout
                          + 4 * ch * cout)
    bytes_accessed = 4 * (int(x2d.size) + N * 4 * ch * HW
                          + sum(int(kp[k].size) for k in kp))

    y4 = pl.pallas_call(
        kernel,
        out_shape=jax.ShapeDtypeStruct((N, 4 * ch, HW), jnp.float32),
        grid=(N,),
        in_specs=[
            pl.BlockSpec((None, cin_p, HW), lambda n: (n, 0, 0)),
            _const_spec((cout, 9 * cin_p)),
            _const_spec((cout, 1)), _const_spec((cout, 1)),
            _const_spec((cout, 9 * cout)),
            _const_spec((cout, 1)), _const_spec((cout, 1)),
            _const_spec((cout, 9 * cout)),
            _const_spec((cout, 1)), _const_spec((cout, 1)),
            _const_spec((4 * ch, cout)),
            _const_spec((4 * ch, 1)),
        ],
        out_specs=pl.BlockSpec((None, 4 * ch, HW), lambda n: (n, 0, 0)),
        compiler_params=pltpu.CompilerParams(
            dimension_semantics=("parallel",)),
        cost_estimate=pl.CostEstimate(flops=flops, transcendentals=0,
                                      bytes_accessed=bytes_accessed),
    )(x2d, kp["w1"], kp["s1"], kp["b1"], kp["wa"], kp["sa"], kp["ba"],
      kp["wb"], kp["sb"], kp["bb"], kp["wu"], kp["bu"])

    # Tiny XLA epilogue: interleave the 2x2 deconv taps -> (N, Ch, 2H, 2W).
    y = y4.reshape(N, 2, 2, ch, H, W)
    y = jnp.transpose(y, (0, 3, 4, 1, 5, 2))
    return y.reshape(N, ch, 2 * H, 2 * W)


# ------------------------------ parameters ----------------------------------


def _fold_bn(conv_b, gamma, beta, rm, rv, eps=1e-5):
    scale = gamma / jnp.sqrt(rv + eps)
    bias = beta + scale * (conv_b - rm)
    return scale, bias


def init_params(key, in_c, out_c):
    ks = jax.random.split(key, 20)

    def nrm(k, shape, scl):
        return scl * jax.random.normal(k, shape, jnp.float32)

    def conv_bn(kset, cin, cout):
        w = nrm(kset[0], (3, 3, cin, cout), 1.0 / jnp.sqrt(9.0 * cin))
        b = nrm(kset[1], (cout,), 0.1)
        gamma = 1.0 + nrm(kset[2], (cout,), 0.1)
        beta = nrm(kset[3], (cout,), 0.1)
        rm = nrm(kset[4], (cout,), 0.1)
        rv = 1.0 + 0.1 * jnp.abs(nrm(kset[5], (cout,), 1.0))
        s, bi = _fold_bn(b, gamma, beta, rm, rv)
        return w, s, bi

    w1, s1, b1 = conv_bn(ks[0:6], in_c, out_c)
    wa, sa, ba = conv_bn(ks[6:12], out_c, out_c)
    wb, sb, bb = conv_bn(ks[12:18], out_c, out_c)
    ch = out_c // 2
    w_up = nrm(ks[18], (out_c, ch, 2, 2), 1.0 / jnp.sqrt(4.0 * out_c))
    b_up = nrm(ks[19], (ch,), 0.1)
    return dict(w1=w1, s1=s1, b1=b1, wa=wa, sa=sa, ba=ba,
                wb=wb, sb=sb, bb=bb, w_up=w_up, b_up=b_up)


# ------------------------------ reference -----------------------------------


def reference_forward(x_nchw, p):
    x = jnp.transpose(x_nchw, (0, 2, 3, 1))

    def cbr(x, w, scale, bias):
        y = jax.lax.conv_general_dilated(
            x, w, (1, 1), "SAME",
            dimension_numbers=("NHWC", "HWIO", "NHWC"),
            precision=jax.lax.Precision.HIGHEST)
        return jnp.maximum(y * scale + bias, 0.0)

    x1 = cbr(x, p["w1"], p["s1"], p["b1"])
    xm = cbr(x1, p["wa"], p["sa"], p["ba"])
    xm = cbr(xm, p["wb"], p["sb"], p["bb"])
    s = xm + x1
    y = jnp.einsum("nijc,code->nidjeo", s, p["w_up"],
                   precision=jax.lax.Precision.HIGHEST)
    N, H, _, W, _, Ch = y.shape
    y = y.reshape(N, 2 * H, 2 * W, Ch) + p["b_up"]
    return jnp.transpose(y, (0, 3, 1, 2))


# -------------------------------- main --------------------------------------


if __name__ == "__main__":
    key = jax.random.PRNGKey(0)
    in_c, out_c = 4, 8
    N, H, W = 2, 16, 16
    kx, kparam = jax.random.split(key)
    x_nchw = jax.random.normal(kx, (N, in_c, H, W), jnp.float32)
    params = init_params(kparam, in_c, out_c)

    roll_sign = _detect_roll_sign()
    kparams = prepare_params(params)

    forward = jax.jit(residual_mid_bridge_forward,
                      static_argnames=("roll_sign",))
    out = forward(x_nchw, kparams, roll_sign=roll_sign)
    out = jax.block_until_ready(out)
    assert out.shape == (N, out_c // 2, 2 * H, 2 * W), out.shape

    ref = reference_forward(x_nchw, params)
    assert jnp.allclose(out, ref, rtol=1e-3, atol=1e-3), float(
        jnp.max(jnp.abs(out - ref)))

    print("KERNEL_OK")
</pallas_src>

<mosaic_0001>
module attributes {stable_mosaic.version = 11 : i64} {
  func.func @probe(%arg0: memref<8x128xf32, #tpu.memory_space<vmem>>, %arg1: memref<8x128xf32, #tpu.memory_space<vmem>>) attributes {dimension_semantics = [], scalar_prefetch = 0 : i64, scratch_operands = 0 : i64, tpu.core_type = #tpu.core_type<tc>} {
    %c0 = arith.constant 0 : index
    %c0_0 = arith.constant 0 : index
    %0 = vector.load %arg0[%c0, %c0_0] : memref<8x128xf32, #tpu.memory_space<vmem>>, vector<8x128xf32>
    %c1_i32 = arith.constant 1 : i32
    %1 = tpu.dynamic_rotate %0 by %c1_i32 dim 1 : vector<8x128xf32>, i32 -> vector<8x128xf32>
    %c0_1 = arith.constant 0 : index
    %c0_2 = arith.constant 0 : index
    %2 = vector.load %arg1[%c0_1, %c0_2] : memref<8x128xf32, #tpu.memory_space<vmem>>, vector<8x128xf32>
    tpu.vector_store %arg1[%c0_1, %c0_2], %1 {strides = array<i32>} : memref<8x128xf32, #tpu.memory_space<vmem>>, vector<8x128xf32>,
    return
  }
}

</mosaic_0001>

<bundles_post_ra>
// kernel: tpu_custom_call.1
= control target key start
LH: loop header
LB: loop body
LE: loop exit
PB: predicated region body
PF: predicated region fallthrough
CT: control target
= control target key end

     0   :  { %6 = vsyncpa [#allocation3], 0  ;;  %s106_s0 = inlined_call_operand.hbm [shape: f32[8,128], index: 0, kind: input, shape index: {}]   ;;  %s107_s1 = inlined_call_operand.hbm [shape: f32[8,128], index: 1, kind: output, shape index: {}]  }
   0x1   :  { %7 = vsyncpa [#allocation4], 0  ;;  %s87_s6 = smov [#allocation2]  }
   0x2   :  { %s14_s7 = sshll.u32 %s87_s6, 4  ;;  %s15_s7 = int_to_ptr.vmem [resolvable:$true] %s14_s7 }
   0x3   :  { %s51_s8 = scalar_lea.vmem %s15_s7, 128  ;;  %p56_p1 = scmp.lt.s32.totalorder %s15_s7, %s15_s7 }
   0x4   :  { %p52_p0 = scmp.ne.s32.totalorder %s15_s7, %s51_s8  ;;  %p57_p2 = scmp.lt.s32.totalorder %s51_s8, %s51_s8 }
   0x6   :  { %p58_p3 = por %p57_p2, %p56_p1 }
   0x8   :  { %p59_p4 = pnand %p58_p3, %p52_p0 }
   0xa   :  { %62 = shalt.err (!%p59_p4)
}
   0xb   :  { %17 = dma.hbm_to_vmem [thread:$0]  %s106_s0, 128, %s15_s7, [#allocation3]  }
   0xc   :  { %83 = dma.done.wait [#allocation3], 128  }
   0xd   :  { %84 = vsyncadd [#allocation3], 4294967168  ;;  %v21_v0 = vld [vmem:[#allocation2] sm:$0xff]  ;;  %s88_s11 = smov 1   ;;  %s89_s12 = smov [#allocation5]  }
   0xe   :  { %22 = vrot.lane.b32.xlu0 %v21_v0, %s88_s11  ;;  %s31_s13 = sshll.u32 %s89_s12, 4  ;;  %s32_s13 = int_to_ptr.vmem [resolvable:$true] %s31_s13 }
   0xf   :  { %s63_s14 = scalar_lea.vmem %s32_s13, 128  ;;  %p68_p6 = scmp.lt.s32.totalorder %s32_s13, %s32_s13 }
  0x10   :  { %p64_p5 = scmp.ne.s32.totalorder %s32_s13, %s63_s14  ;;  %p69_p7 = scmp.lt.s32.totalorder %s63_s14, %s63_s14 }
  0x12   :  { %p70_p8 = por %p69_p7, %p68_p6 }
  0x14   :  { %p71_p9 = pnand %p70_p8, %p64_p5 }
  0x80   :  { %v23_v1 = vpop.permute.xlu0 %22 }
  0x81   :  { %24 = vst [vmem:[#allocation5] sm:$0xff] %v23_v1 }
  0x82   :  { %74 = shalt.err (!%p71_p9)
}
  0x83   :  { %34 = dma.vmem_to_hbm [thread:$0]  %s32_s13, 128, %s107_s1, [#allocation4]  }
  0x84   :  { %85 = dma.done.wait [#allocation4], 128  }
  0x85   :  { %86 = vsyncadd [#allocation4], 4294967168 }
  0x86   :  { %38 = vsyncpa [#allocation3], 1 }
  0x87   :  { %39 = vsyncpa [#allocation4], 1 }

</bundles_post_ra>
